<compile_context>
chip_gen: v7x
topology: tpu7x:2x2x1
jax: 0.10.0
libtpu: 0.0.40
codegen_flags: <defaults>
</compile_context>

<pallas_src>
import functools

import jax
import jax.numpy as jnp
from jax.experimental import pallas as pl
from jax.experimental.pallas import tpu as pltpu

BN_EPS = 1e-5


# ---------------------------------------------------------------------------
# Fused Pallas kernel: full inconv (two conv_dw blocks), one batch element/step
# Layout inside the kernel: (C, H*W) -- C on sublanes, flattened spatial on lanes.
# ---------------------------------------------------------------------------
def _inconv_kernel(x_ref,
                   dw1_ref, b1_ref, pw1_ref, c1_ref,
                   dw2_ref, b2_ref, pw2_ref, c2_ref,
                   o_ref, *, H, W):
    HW = H * W
    x = x_ref[0]                                              # (Cin, HW) f32

    # Border-validity masks over the flattened spatial (lane) axis.  Row masks need
    # no division; column index uses a bit-AND when W is a power of two.
    pos = jax.lax.broadcasted_iota(jnp.int32, (1, HW), 1)
    if W & (W - 1) == 0:
        col = jnp.bitwise_and(pos, W - 1)
    else:
        col = jax.lax.rem(pos, W)
    row_ok = (pos >= W, None, pos < (H - 1) * W)              # dh = 0, 1, 2
    col_ok = (col >= 1, None, col <= W - 2)                   # dw = 0, 1, 2

    def depthwise_relu(inp, k_ref, b_ref):
        """3x3 depthwise (stride 1, pad 1) + folded-BN bias + ReLU.

        inp: (C, HW); k_ref: (C, 9) with BN scale folded; b_ref: (C, 1).
        Each tap is a static lane rotation (XLU) of the flattened spatial axis plus
        a border mask; the accumulator starts from the first tap product.
        """
        k = k_ref[...]
        acc = None
        for dh in range(3):
            for dw in range(3):
                off = (dh - 1) * W + (dw - 1)                 # source offset per tap
                tap = inp if off == 0 else pltpu.roll(inp, (-off) % HW, axis=1)
                if row_ok[dh] is not None and col_ok[dw] is not None:
                    mask = jnp.logical_and(row_ok[dh], col_ok[dw])
                elif row_ok[dh] is not None:
                    mask = row_ok[dh]
                else:
                    mask = col_ok[dw]                         # may be None (center tap)
                if mask is not None:
                    tap = jnp.where(mask, tap, 0.0)
                t = dh * 3 + dw
                contrib = tap * k[:, t:t + 1]                 # (C,HW) * (C,1)
                acc = contrib if acc is None else acc + contrib
        return jnp.maximum(acc + b_ref[...], 0.0)

    def pointwise_relu(y, pwt_ref, b_ref):
        """1x1 conv as Cin VPU broadcast-MACs (MXU is <1% utilized at these shapes).

        y: (Cin, HW); pwt_ref: (Cout, Cin) with BN scale folded; b_ref: (Cout, 1).
        """
        pwt = pwt_ref[...]
        z = y[0:1, :] * pwt[:, 0:1]                           # (1,HW)*(Cout,1) -> (Cout,HW)
        for c in range(1, y.shape[0]):
            z = z + y[c:c + 1, :] * pwt[:, c:c + 1]
        return jnp.maximum(z + b_ref[...], 0.0)

    # conv_dw block 1 -> block 2; the intermediate z1 stays a VMEM value
    # (no halo scratch, no store/reload, no HBM round trip).
    y1 = depthwise_relu(x, dw1_ref, b1_ref)
    z1 = pointwise_relu(y1, pw1_ref, c1_ref)
    y2 = depthwise_relu(z1, dw2_ref, b2_ref)
    z2 = pointwise_relu(y2, pw2_ref, c2_ref)

    # Single lane-dense store: last dim = H*W (a multiple of 128 at these shapes).
    o_ref[0] = z2.astype(o_ref.dtype)


def inconv_apply(x_flat, blk1, blk2, H, W):
    """x_flat: (N, Cin, H*W) -> (N, Cout, H*W); whole inconv in one pallas_call."""
    N, Cin, HW = x_flat.shape
    dw1, b1, pw1t, c1 = blk1
    dw2, b2, pw2t, c2 = blk2
    Cout = pw1t.shape[0]

    def w_spec(shape):
        return pl.BlockSpec(shape, lambda n: (0,) * len(shape))

    kernel = functools.partial(_inconv_kernel, H=H, W=W)

    return pl.pallas_call(
        kernel,
        out_shape=jax.ShapeDtypeStruct((N, Cout, HW), x_flat.dtype),
        grid=(N,),
        in_specs=[pl.BlockSpec((1, Cin, HW), lambda n: (n, 0, 0)),
                  w_spec((Cin, 9)), w_spec((Cin, 1)),          # dw1 (BN folded), bias1
                  w_spec((Cout, Cin)), w_spec((Cout, 1)),      # pw1^T (BN folded), bias1'
                  w_spec((Cout, 9)), w_spec((Cout, 1)),        # dw2 (BN folded), bias2
                  w_spec((Cout, Cout)), w_spec((Cout, 1))],    # pw2^T (BN folded), bias2'
        out_specs=pl.BlockSpec((1, Cout, HW), lambda n: (n, 0, 0)),
        compiler_params=pltpu.CompilerParams(dimension_semantics=("parallel",)),
    )(x_flat, dw1, b1, pw1t, c1, dw2, b2, pw2t, c2)


# ---------------------------------------------------------------------------
# Parameter init (deterministic, synthetic), BN folded to scale/bias
# ---------------------------------------------------------------------------
def init_conv_dw_params(key, inp, oup):
    ks = jax.random.split(key, 10)
    dw = jax.random.normal(ks[0], (3, 3, inp), jnp.float32) * 0.3
    pw = jax.random.normal(ks[1], (inp, oup), jnp.float32) / jnp.sqrt(float(inp))

    g1 = jax.random.uniform(ks[2], (inp,), minval=0.5, maxval=1.5)
    be1 = jax.random.normal(ks[3], (inp,)) * 0.1
    m1 = jax.random.normal(ks[4], (inp,)) * 0.1
    v1 = jax.random.uniform(ks[5], (inp,), minval=0.5, maxval=1.5)

    g2 = jax.random.uniform(ks[6], (oup,), minval=0.5, maxval=1.5)
    be2 = jax.random.normal(ks[7], (oup,)) * 0.1
    m2 = jax.random.normal(ks[8], (oup,)) * 0.1
    v2 = jax.random.uniform(ks[9], (oup,), minval=0.5, maxval=1.5)

    s1 = g1 / jnp.sqrt(v1 + BN_EPS)
    b1 = be1 - m1 * s1
    s2 = g2 / jnp.sqrt(v2 + BN_EPS)
    b2 = be2 - m2 * s2
    return {
        "dw": dw, "pw": pw,
        "s1": s1.reshape(1, inp).astype(jnp.float32),
        "b1": b1.reshape(1, inp).astype(jnp.float32),
        "s2": s2.reshape(1, oup).astype(jnp.float32),
        "b2": b2.reshape(1, oup).astype(jnp.float32),
    }


def init_inconv_params(key, in_ch, out_ch):
    # double_conv = Sequential(conv_dw(in_ch, out_ch, 1), conv_dw(out_ch, out_ch, 1))
    k1, k2 = jax.random.split(key, 2)
    return [init_conv_dw_params(k1, in_ch, out_ch),
            init_conv_dw_params(k2, out_ch, out_ch)]


def fold_conv_dw_params(p):
    """One-time constant fold of BN scales into the conv weights, kernel layout.

    Returns (dwk (C,9), b1 (C,1), pwt (Cout,C), b2 (Cout,1)) with channels on the
    leading (sublane) axis so per-channel weight slices need no in-kernel relayout.
    """
    inp = p["dw"].shape[-1]
    oup = p["pw"].shape[-1]
    dwk = (p["dw"] * p["s1"][0]).reshape(9, inp).T            # (inp, 9), [c, dh*3+dw]
    b1 = p["b1"].reshape(inp, 1)
    pwt = (p["pw"] * p["s2"][0]).T                            # (oup, inp), per-out-col scale
    b2 = p["b2"].reshape(oup, 1)
    return (dwk.astype(jnp.float32), b1.astype(jnp.float32),
            pwt.astype(jnp.float32), b2.astype(jnp.float32))


def inconv_forward(x_nchw, params):
    """inconv forward.  x: (N, C_in, H, W) NCHW -> (N, C_out, H, W) NCHW.

    No transposes: NCHW <-> (N, C, H*W) are free contiguous reshapes in HBM.
    """
    N, Cin, H, W = x_nchw.shape
    Cout = params[0]["pw"].shape[1]
    blk1 = fold_conv_dw_params(params[0])
    blk2 = fold_conv_dw_params(params[1])
    out = inconv_apply(x_nchw.reshape(N, Cin, H * W), blk1, blk2, H, W)
    return out.reshape(N, Cout, H, W)


# ---------------------------------------------------------------------------
# Pure-JAX reference (independent path via lax.conv_general_dilated, NCHW,
# using the UNfolded BN scale/bias so the weight folding is validated too)
# ---------------------------------------------------------------------------
def ref_conv_dw(x, p):
    C = x.shape[1]
    Co = p["pw"].shape[1]
    k = p["dw"].reshape(3, 3, 1, C)          # HWIO, feature_group_count=C
    y = jax.lax.conv_general_dilated(
        x, k, (1, 1), "SAME",
        dimension_numbers=("NCHW", "HWIO", "NCHW"),
        feature_group_count=C)
    y = jnp.maximum(y * p["s1"].reshape(1, C, 1, 1) + p["b1"].reshape(1, C, 1, 1), 0.0)
    z = jnp.einsum("nchw,co->nohw", y, p["pw"])
    z = jnp.maximum(z * p["s2"].reshape(1, Co, 1, 1) + p["b2"].reshape(1, Co, 1, 1), 0.0)
    return z


def ref_inconv(x, params):
    for p in params:
        x = ref_conv_dw(x, p)
    return x


if __name__ == "__main__":
    key = jax.random.PRNGKey(0)
    k_x, k_p = jax.random.split(key)

    N, in_ch, H, W = 2, 4, 16, 16
    out_ch = 8

    x = jax.random.normal(k_x, (N, in_ch, H, W), jnp.float32)
    params = init_inconv_params(k_p, in_ch, out_ch)

    out = jax.block_until_ready(inconv_forward(x, params))
    ref = jax.block_until_ready(ref_inconv(x, params))

    assert out.shape == (N, out_ch, H, W), out.shape
    assert jnp.allclose(out, ref, rtol=1e-4, atol=1e-4), float(jnp.max(jnp.abs(out - ref)))

    print("KERNEL_OK")
</pallas_src>

<mosaic_0001>
module attributes {stable_mosaic.version = 11 : i64} {
  func.func @_inconv_kernel(%arg0: i32, %arg1: memref<1x4x256xf32, #tpu.memory_space<vmem>>, %arg2: memref<4x9xf32, #tpu.memory_space<vmem>>, %arg3: memref<4x1xf32, #tpu.memory_space<vmem>>, %arg4: memref<8x4xf32, #tpu.memory_space<vmem>>, %arg5: memref<8x1xf32, #tpu.memory_space<vmem>>, %arg6: memref<8x9xf32, #tpu.memory_space<vmem>>, %arg7: memref<8x1xf32, #tpu.memory_space<vmem>>, %arg8: memref<8x8xf32, #tpu.memory_space<vmem>>, %arg9: memref<8x1xf32, #tpu.memory_space<vmem>>, %arg10: memref<1x8x256xf32, #tpu.memory_space<vmem>>) attributes {dimension_semantics = [#tpu.dimension_semantics<parallel>], iteration_bounds = array<i64: 2>, scalar_prefetch = 0 : i64, scratch_operands = 0 : i64, tpu.core_type = #tpu.core_type<tc>, window_params = [{transform_indices = @transform_0, window_bounds = array<i64: 1, 4, 256>}, {pipeline_mode = #tpu.pipeline_mode<synchronous>, transform_indices = @transform_1, window_bounds = array<i64: 4, 9>}, {pipeline_mode = #tpu.pipeline_mode<synchronous>, transform_indices = @transform_2, window_bounds = array<i64: 4, 1>}, {pipeline_mode = #tpu.pipeline_mode<synchronous>, transform_indices = @transform_3, window_bounds = array<i64: 8, 4>}, {pipeline_mode = #tpu.pipeline_mode<synchronous>, transform_indices = @transform_4, window_bounds = array<i64: 8, 1>}, {pipeline_mode = #tpu.pipeline_mode<synchronous>, transform_indices = @transform_5, window_bounds = array<i64: 8, 9>}, {pipeline_mode = #tpu.pipeline_mode<synchronous>, transform_indices = @transform_6, window_bounds = array<i64: 8, 1>}, {pipeline_mode = #tpu.pipeline_mode<synchronous>, transform_indices = @transform_7, window_bounds = array<i64: 8, 8>}, {pipeline_mode = #tpu.pipeline_mode<synchronous>, transform_indices = @transform_8, window_bounds = array<i64: 8, 1>}, {transform_indices = @transform_9, window_bounds = array<i64: 1, 8, 256>}]} {
    %c0 = arith.constant 0 : index
    %c0_0 = arith.constant 0 : index
    %c0_1 = arith.constant 0 : index
    %0 = vector.load %arg1[%c0, %c0_0, %c0_1] : memref<1x4x256xf32, #tpu.memory_space<vmem>>, vector<1x4x256xf32>
    %1 = vector.shape_cast %0 : vector<1x4x256xf32> to vector<4x256xf32>
    %2 = tpu.iota {dimensions = array<i32: 1>} : vector<1x256xi32>
    %c15_i32 = arith.constant 15 : i32
    %3 = vector.broadcast %c15_i32 : i32 to vector<1x256xi32>
    %4 = arith.andi %2, %3 : vector<1x256xi32>
    %c16_i32 = arith.constant 16 : i32
    %5 = vector.broadcast %c16_i32 : i32 to vector<1x256xi32>
    %6 = arith.cmpi sge, %2, %5 : vector<1x256xi32>
    %c240_i32 = arith.constant 240 : i32
    %7 = vector.broadcast %c240_i32 : i32 to vector<1x256xi32>
    %8 = arith.cmpi slt, %2, %7 : vector<1x256xi32>
    %c1_i32 = arith.constant 1 : i32
    %9 = vector.broadcast %c1_i32 : i32 to vector<1x256xi32>
    %10 = arith.cmpi sge, %4, %9 : vector<1x256xi32>
    %c14_i32 = arith.constant 14 : i32
    %11 = vector.broadcast %c14_i32 : i32 to vector<1x256xi32>
    %12 = arith.cmpi sle, %4, %11 : vector<1x256xi32>
    %c0_2 = arith.constant 0 : index
    %c0_3 = arith.constant 0 : index
    %13 = vector.load %arg2[%c0_2, %c0_3] : memref<4x9xf32, #tpu.memory_space<vmem>>, vector<4x9xf32>
    %c17_i32 = arith.constant 17 : i32
    %14 = tpu.dynamic_rotate %1 by %c17_i32 dim 1 : vector<4x256xf32>, i32 -> vector<4x256xf32>
    %15 = arith.andi %6, %10 : vector<1x256xi1>
    %cst = arith.constant 0.000000e+00 : f32
    %16 = vector.shape_cast %15 : vector<1x256xi1> to vector<1x256xi1>
    %17 = vector.broadcast %16 : vector<1x256xi1> to vector<4x256xi1>
    %18 = vector.broadcast %cst : f32 to vector<4x256xf32>
    %19 = arith.select %17, %14, %18 : vector<4x256xi1>, vector<4x256xf32>
    %20 = vector.extract_strided_slice %13 {offsets = [0, 0], sizes = [4, 1], strides = [1, 1]} : vector<4x9xf32> to vector<4x1xf32>
    %21 = vector.broadcast %20 : vector<4x1xf32> to vector<4x256xf32>
    %22 = arith.mulf %19, %21 : vector<4x256xf32>
    %c16_i32_4 = arith.constant 16 : i32
    %23 = tpu.dynamic_rotate %1 by %c16_i32_4 dim 1 : vector<4x256xf32>, i32 -> vector<4x256xf32>
    %cst_5 = arith.constant 0.000000e+00 : f32
    %24 = vector.shape_cast %6 : vector<1x256xi1> to vector<1x256xi1>
    %25 = vector.broadcast %24 : vector<1x256xi1> to vector<4x256xi1>
    %26 = vector.broadcast %cst_5 : f32 to vector<4x256xf32>
    %27 = arith.select %25, %23, %26 : vector<4x256xi1>, vector<4x256xf32>
    %28 = vector.extract_strided_slice %13 {offsets = [0, 1], sizes = [4, 1], strides = [1, 1]} : vector<4x9xf32> to vector<4x1xf32>
    %29 = vector.broadcast %28 : vector<4x1xf32> to vector<4x256xf32>
    %30 = arith.mulf %27, %29 : vector<4x256xf32>
    %31 = arith.addf %22, %30 : vector<4x256xf32>
    %c15_i32_6 = arith.constant 15 : i32
    %32 = tpu.dynamic_rotate %1 by %c15_i32_6 dim 1 : vector<4x256xf32>, i32 -> vector<4x256xf32>
    %33 = arith.andi %6, %12 : vector<1x256xi1>
    %cst_7 = arith.constant 0.000000e+00 : f32
    %34 = vector.shape_cast %33 : vector<1x256xi1> to vector<1x256xi1>
    %35 = vector.broadcast %34 : vector<1x256xi1> to vector<4x256xi1>
    %36 = vector.broadcast %cst_7 : f32 to vector<4x256xf32>
    %37 = arith.select %35, %32, %36 : vector<4x256xi1>, vector<4x256xf32>
    %38 = vector.extract_strided_slice %13 {offsets = [0, 2], sizes = [4, 1], strides = [1, 1]} : vector<4x9xf32> to vector<4x1xf32>
    %39 = vector.broadcast %38 : vector<4x1xf32> to vector<4x256xf32>
    %40 = arith.mulf %37, %39 : vector<4x256xf32>
    %41 = arith.addf %31, %40 : vector<4x256xf32>
    %c1_i32_8 = arith.constant 1 : i32
    %42 = tpu.dynamic_rotate %1 by %c1_i32_8 dim 1 : vector<4x256xf32>, i32 -> vector<4x256xf32>
    %cst_9 = arith.constant 0.000000e+00 : f32
    %43 = vector.shape_cast %10 : vector<1x256xi1> to vector<1x256xi1>
    %44 = vector.broadcast %43 : vector<1x256xi1> to vector<4x256xi1>
    %45 = vector.broadcast %cst_9 : f32 to vector<4x256xf32>
    %46 = arith.select %44, %42, %45 : vector<4x256xi1>, vector<4x256xf32>
    %47 = vector.extract_strided_slice %13 {offsets = [0, 3], sizes = [4, 1], strides = [1, 1]} : vector<4x9xf32> to vector<4x1xf32>
    %48 = vector.broadcast %47 : vector<4x1xf32> to vector<4x256xf32>
    %49 = arith.mulf %46, %48 : vector<4x256xf32>
    %50 = arith.addf %41, %49 : vector<4x256xf32>
    %51 = vector.extract_strided_slice %13 {offsets = [0, 4], sizes = [4, 1], strides = [1, 1]} : vector<4x9xf32> to vector<4x1xf32>
    %52 = vector.broadcast %51 : vector<4x1xf32> to vector<4x256xf32>
    %53 = arith.mulf %1, %52 : vector<4x256xf32>
    %54 = arith.addf %50, %53 : vector<4x256xf32>
    %c255_i32 = arith.constant 255 : i32
    %55 = tpu.dynamic_rotate %1 by %c255_i32 dim 1 : vector<4x256xf32>, i32 -> vector<4x256xf32>
    %cst_10 = arith.constant 0.000000e+00 : f32
    %56 = vector.shape_cast %12 : vector<1x256xi1> to vector<1x256xi1>
    %57 = vector.broadcast %56 : vector<1x256xi1> to vector<4x256xi1>
    %58 = vector.broadcast %cst_10 : f32 to vector<4x256xf32>
    %59 = arith.select %57, %55, %58 : vector<4x256xi1>, vector<4x256xf32>
    %60 = vector.extract_strided_slice %13 {offsets = [0, 5], sizes = [4, 1], strides = [1, 1]} : vector<4x9xf32> to vector<4x1xf32>
    %61 = vector.broadcast %60 : vector<4x1xf32> to vector<4x256xf32>
    %62 = arith.mulf %59, %61 : vector<4x256xf32>
    %63 = arith.addf %54, %62 : vector<4x256xf32>
    %c241_i32 = arith.constant 241 : i32
    %64 = tpu.dynamic_rotate %1 by %c241_i32 dim 1 : vector<4x256xf32>, i32 -> vector<4x256xf32>
    %65 = arith.andi %8, %10 : vector<1x256xi1>
    %cst_11 = arith.constant 0.000000e+00 : f32
    %66 = vector.shape_cast %65 : vector<1x256xi1> to vector<1x256xi1>
    %67 = vector.broadcast %66 : vector<1x256xi1> to vector<4x256xi1>
    %68 = vector.broadcast %cst_11 : f32 to vector<4x256xf32>
    %69 = arith.select %67, %64, %68 : vector<4x256xi1>, vector<4x256xf32>
    %70 = vector.extract_strided_slice %13 {offsets = [0, 6], sizes = [4, 1], strides = [1, 1]} : vector<4x9xf32> to vector<4x1xf32>
    %71 = vector.broadcast %70 : vector<4x1xf32> to vector<4x256xf32>
    %72 = arith.mulf %69, %71 : vector<4x256xf32>
    %73 = arith.addf %63, %72 : vector<4x256xf32>
    %c240_i32_12 = arith.constant 240 : i32
    %74 = tpu.dynamic_rotate %1 by %c240_i32_12 dim 1 : vector<4x256xf32>, i32 -> vector<4x256xf32>
    %cst_13 = arith.constant 0.000000e+00 : f32
    %75 = vector.shape_cast %8 : vector<1x256xi1> to vector<1x256xi1>
    %76 = vector.broadcast %75 : vector<1x256xi1> to vector<4x256xi1>
    %77 = vector.broadcast %cst_13 : f32 to vector<4x256xf32>
    %78 = arith.select %76, %74, %77 : vector<4x256xi1>, vector<4x256xf32>
    %79 = vector.extract_strided_slice %13 {offsets = [0, 7], sizes = [4, 1], strides = [1, 1]} : vector<4x9xf32> to vector<4x1xf32>
    %80 = vector.broadcast %79 : vector<4x1xf32> to vector<4x256xf32>
    %81 = arith.mulf %78, %80 : vector<4x256xf32>
    %82 = arith.addf %73, %81 : vector<4x256xf32>
    %c239_i32 = arith.constant 239 : i32
    %83 = tpu.dynamic_rotate %1 by %c239_i32 dim 1 : vector<4x256xf32>, i32 -> vector<4x256xf32>
    %84 = arith.andi %8, %12 : vector<1x256xi1>
    %cst_14 = arith.constant 0.000000e+00 : f32
    %85 = vector.shape_cast %84 : vector<1x256xi1> to vector<1x256xi1>
    %86 = vector.broadcast %85 : vector<1x256xi1> to vector<4x256xi1>
    %87 = vector.broadcast %cst_14 : f32 to vector<4x256xf32>
    %88 = arith.select %86, %83, %87 : vector<4x256xi1>, vector<4x256xf32>
    %89 = vector.extract_strided_slice %13 {offsets = [0, 8], sizes = [4, 1], strides = [1, 1]} : vector<4x9xf32> to vector<4x1xf32>
    %90 = vector.broadcast %89 : vector<4x1xf32> to vector<4x256xf32>
    %91 = arith.mulf %88, %90 : vector<4x256xf32>
    %92 = arith.addf %82, %91 : vector<4x256xf32>
    %c0_15 = arith.constant 0 : index
    %c0_16 = arith.constant 0 : index
    %93 = vector.load %arg3[%c0_15, %c0_16] : memref<4x1xf32, #tpu.memory_space<vmem>>, vector<4x1xf32>
    %94 = vector.broadcast %93 : vector<4x1xf32> to vector<4x256xf32>
    %95 = arith.addf %92, %94 : vector<4x256xf32>
    %cst_17 = arith.constant 0.000000e+00 : f32
    %96 = vector.broadcast %cst_17 : f32 to vector<4x256xf32>
    %97 = arith.maximumf %95, %96 : vector<4x256xf32>
    %c0_18 = arith.constant 0 : index
    %c0_19 = arith.constant 0 : index
    %98 = vector.load %arg4[%c0_18, %c0_19] : memref<8x4xf32, #tpu.memory_space<vmem>>, vector<8x4xf32>
    %99 = vector.extract_strided_slice %97 {offsets = [0, 0], sizes = [1, 256], strides = [1, 1]} : vector<4x256xf32> to vector<1x256xf32>
    %100 = vector.extract_strided_slice %98 {offsets = [0, 0], sizes = [8, 1], strides = [1, 1]} : vector<8x4xf32> to vector<8x1xf32>
    %101 = vector.broadcast %99 : vector<1x256xf32> to vector<8x256xf32>
    %102 = vector.broadcast %100 : vector<8x1xf32> to vector<8x256xf32>
    %103 = arith.mulf %101, %102 : vector<8x256xf32>
    %104 = vector.extract_strided_slice %97 {offsets = [1, 0], sizes = [1, 256], strides = [1, 1]} : vector<4x256xf32> to vector<1x256xf32>
    %105 = vector.extract_strided_slice %98 {offsets = [0, 1], sizes = [8, 1], strides = [1, 1]} : vector<8x4xf32> to vector<8x1xf32>
    %106 = vector.broadcast %104 : vector<1x256xf32> to vector<8x256xf32>
    %107 = vector.broadcast %105 : vector<8x1xf32> to vector<8x256xf32>
    %108 = arith.mulf %106, %107 : vector<8x256xf32>
    %109 = arith.addf %103, %108 : vector<8x256xf32>
    %110 = vector.extract_strided_slice %97 {offsets = [2, 0], sizes = [1, 256], strides = [1, 1]} : vector<4x256xf32> to vector<1x256xf32>
    %111 = vector.extract_strided_slice %98 {offsets = [0, 2], sizes = [8, 1], strides = [1, 1]} : vector<8x4xf32> to vector<8x1xf32>
    %112 = vector.broadcast %110 : vector<1x256xf32> to vector<8x256xf32>
    %113 = vector.broadcast %111 : vector<8x1xf32> to vector<8x256xf32>
    %114 = arith.mulf %112, %113 : vector<8x256xf32>
    %115 = arith.addf %109, %114 : vector<8x256xf32>
    %116 = vector.extract_strided_slice %97 {offsets = [3, 0], sizes = [1, 256], strides = [1, 1]} : vector<4x256xf32> to vector<1x256xf32>
    %117 = vector.extract_strided_slice %98 {offsets = [0, 3], sizes = [8, 1], strides = [1, 1]} : vector<8x4xf32> to vector<8x1xf32>
    %118 = vector.broadcast %116 : vector<1x256xf32> to vector<8x256xf32>
    %119 = vector.broadcast %117 : vector<8x1xf32> to vector<8x256xf32>
    %120 = arith.mulf %118, %119 : vector<8x256xf32>
    %121 = arith.addf %115, %120 : vector<8x256xf32>
    %c0_20 = arith.constant 0 : index
    %c0_21 = arith.constant 0 : index
    %122 = vector.load %arg5[%c0_20, %c0_21] : memref<8x1xf32, #tpu.memory_space<vmem>>, vector<8x1xf32>
    %123 = vector.broadcast %122 : vector<8x1xf32> to vector<8x256xf32>
    %124 = arith.addf %121, %123 : vector<8x256xf32>
    %cst_22 = arith.constant 0.000000e+00 : f32
    %125 = vector.broadcast %cst_22 : f32 to vector<8x256xf32>
    %126 = arith.maximumf %124, %125 : vector<8x256xf32>
    %c0_23 = arith.constant 0 : index
    %c0_24 = arith.constant 0 : index
    %127 = vector.load %arg6[%c0_23, %c0_24] : memref<8x9xf32, #tpu.memory_space<vmem>>, vector<8x9xf32>
    %c17_i32_25 = arith.constant 17 : i32
    %128 = tpu.dynamic_rotate %126 by %c17_i32_25 dim 1 : vector<8x256xf32>, i32 -> vector<8x256xf32>
    %129 = arith.andi %6, %10 : vector<1x256xi1>
    %cst_26 = arith.constant 0.000000e+00 : f32
    %130 = vector.shape_cast %129 : vector<1x256xi1> to vector<1x256xi1>
    %131 = vector.broadcast %130 : vector<1x256xi1> to vector<8x256xi1>
    %132 = vector.broadcast %cst_26 : f32 to vector<8x256xf32>
    %133 = arith.select %131, %128, %132 : vector<8x256xi1>, vector<8x256xf32>
    %134 = vector.extract_strided_slice %127 {offsets = [0, 0], sizes = [8, 1], strides = [1, 1]} : vector<8x9xf32> to vector<8x1xf32>
    %135 = vector.broadcast %134 : vector<8x1xf32> to vector<8x256xf32>
    %136 = arith.mulf %133, %135 : vector<8x256xf32>
    %c16_i32_27 = arith.constant 16 : i32
    %137 = tpu.dynamic_rotate %126 by %c16_i32_27 dim 1 : vector<8x256xf32>, i32 -> vector<8x256xf32>
    %cst_28 = arith.constant 0.000000e+00 : f32
    %138 = vector.shape_cast %6 : vector<1x256xi1> to vector<1x256xi1>
    %139 = vector.broadcast %138 : vector<1x256xi1> to vector<8x256xi1>
    %140 = vector.broadcast %cst_28 : f32 to vector<8x256xf32>
    %141 = arith.select %139, %137, %140 : vector<8x256xi1>, vector<8x256xf32>
    %142 = vector.extract_strided_slice %127 {offsets = [0, 1], sizes = [8, 1], strides = [1, 1]} : vector<8x9xf32> to vector<8x1xf32>
    %143 = vector.broadcast %142 : vector<8x1xf32> to vector<8x256xf32>
    %144 = arith.mulf %141, %143 : vector<8x256xf32>
    %145 = arith.addf %136, %144 : vector<8x256xf32>
    %c15_i32_29 = arith.constant 15 : i32
    %146 = tpu.dynamic_rotate %126 by %c15_i32_29 dim 1 : vector<8x256xf32>, i32 -> vector<8x256xf32>
    %147 = arith.andi %6, %12 : vector<1x256xi1>
    %cst_30 = arith.constant 0.000000e+00 : f32
    %148 = vector.shape_cast %147 : vector<1x256xi1> to vector<1x256xi1>
    %149 = vector.broadcast %148 : vector<1x256xi1> to vector<8x256xi1>
    %150 = vector.broadcast %cst_30 : f32 to vector<8x256xf32>
    %151 = arith.select %149, %146, %150 : vector<8x256xi1>, vector<8x256xf32>
    %152 = vector.extract_strided_slice %127 {offsets = [0, 2], sizes = [8, 1], strides = [1, 1]} : vector<8x9xf32> to vector<8x1xf32>
    %153 = vector.broadcast %152 : vector<8x1xf32> to vector<8x256xf32>
    %154 = arith.mulf %151, %153 : vector<8x256xf32>
    %155 = arith.addf %145, %154 : vector<8x256xf32>
    %c1_i32_31 = arith.constant 1 : i32
    %156 = tpu.dynamic_rotate %126 by %c1_i32_31 dim 1 : vector<8x256xf32>, i32 -> vector<8x256xf32>
    %cst_32 = arith.constant 0.000000e+00 : f32
    %157 = vector.shape_cast %10 : vector<1x256xi1> to vector<1x256xi1>
    %158 = vector.broadcast %157 : vector<1x256xi1> to vector<8x256xi1>
    %159 = vector.broadcast %cst_32 : f32 to vector<8x256xf32>
    %160 = arith.select %158, %156, %159 : vector<8x256xi1>, vector<8x256xf32>
    %161 = vector.extract_strided_slice %127 {offsets = [0, 3], sizes = [8, 1], strides = [1, 1]} : vector<8x9xf32> to vector<8x1xf32>
    %162 = vector.broadcast %161 : vector<8x1xf32> to vector<8x256xf32>
    %163 = arith.mulf %160, %162 : vector<8x256xf32>
    %164 = arith.addf %155, %163 : vector<8x256xf32>
    %165 = vector.extract_strided_slice %127 {offsets = [0, 4], sizes = [8, 1], strides = [1, 1]} : vector<8x9xf32> to vector<8x1xf32>
    %166 = vector.broadcast %165 : vector<8x1xf32> to vector<8x256xf32>
    %167 = arith.mulf %126, %166 : vector<8x256xf32>
    %168 = arith.addf %164, %167 : vector<8x256xf32>
    %c255_i32_33 = arith.constant 255 : i32
    %169 = tpu.dynamic_rotate %126 by %c255_i32_33 dim 1 : vector<8x256xf32>, i32 -> vector<8x256xf32>
    %cst_34 = arith.constant 0.000000e+00 : f32
    %170 = vector.shape_cast %12 : vector<1x256xi1> to vector<1x256xi1>
    %171 = vector.broadcast %170 : vector<1x256xi1> to vector<8x256xi1>
    %172 = vector.broadcast %cst_34 : f32 to vector<8x256xf32>
    %173 = arith.select %171, %169, %172 : vector<8x256xi1>, vector<8x256xf32>
    %174 = vector.extract_strided_slice %127 {offsets = [0, 5], sizes = [8, 1], strides = [1, 1]} : vector<8x9xf32> to vector<8x1xf32>
    %175 = vector.broadcast %174 : vector<8x1xf32> to vector<8x256xf32>
    %176 = arith.mulf %173, %175 : vector<8x256xf32>
    %177 = arith.addf %168, %176 : vector<8x256xf32>
    %c241_i32_35 = arith.constant 241 : i32
    %178 = tpu.dynamic_rotate %126 by %c241_i32_35 dim 1 : vector<8x256xf32>, i32 -> vector<8x256xf32>
    %179 = arith.andi %8, %10 : vector<1x256xi1>
    %cst_36 = arith.constant 0.000000e+00 : f32
    %180 = vector.shape_cast %179 : vector<1x256xi1> to vector<1x256xi1>
    %181 = vector.broadcast %180 : vector<1x256xi1> to vector<8x256xi1>
    %182 = vector.broadcast %cst_36 : f32 to vector<8x256xf32>
    %183 = arith.select %181, %178, %182 : vector<8x256xi1>, vector<8x256xf32>
    %184 = vector.extract_strided_slice %127 {offsets = [0, 6], sizes = [8, 1], strides = [1, 1]} : vector<8x9xf32> to vector<8x1xf32>
    %185 = vector.broadcast %184 : vector<8x1xf32> to vector<8x256xf32>
    %186 = arith.mulf %183, %185 : vector<8x256xf32>
    %187 = arith.addf %177, %186 : vector<8x256xf32>
    %c240_i32_37 = arith.constant 240 : i32
    %188 = tpu.dynamic_rotate %126 by %c240_i32_37 dim 1 : vector<8x256xf32>, i32 -> vector<8x256xf32>
    %cst_38 = arith.constant 0.000000e+00 : f32
    %189 = vector.shape_cast %8 : vector<1x256xi1> to vector<1x256xi1>
    %190 = vector.broadcast %189 : vector<1x256xi1> to vector<8x256xi1>
    %191 = vector.broadcast %cst_38 : f32 to vector<8x256xf32>
    %192 = arith.select %190, %188, %191 : vector<8x256xi1>, vector<8x256xf32>
    %193 = vector.extract_strided_slice %127 {offsets = [0, 7], sizes = [8, 1], strides = [1, 1]} : vector<8x9xf32> to vector<8x1xf32>
    %194 = vector.broadcast %193 : vector<8x1xf32> to vector<8x256xf32>
    %195 = arith.mulf %192, %194 : vector<8x256xf32>
    %196 = arith.addf %187, %195 : vector<8x256xf32>
    %c239_i32_39 = arith.constant 239 : i32
    %197 = tpu.dynamic_rotate %126 by %c239_i32_39 dim 1 : vector<8x256xf32>, i32 -> vector<8x256xf32>
    %198 = arith.andi %8, %12 : vector<1x256xi1>
    %cst_40 = arith.constant 0.000000e+00 : f32
    %199 = vector.shape_cast %198 : vector<1x256xi1> to vector<1x256xi1>
    %200 = vector.broadcast %199 : vector<1x256xi1> to vector<8x256xi1>
    %201 = vector.broadcast %cst_40 : f32 to vector<8x256xf32>
    %202 = arith.select %200, %197, %201 : vector<8x256xi1>, vector<8x256xf32>
    %203 = vector.extract_strided_slice %127 {offsets = [0, 8], sizes = [8, 1], strides = [1, 1]} : vector<8x9xf32> to vector<8x1xf32>
    %204 = vector.broadcast %203 : vector<8x1xf32> to vector<8x256xf32>
    %205 = arith.mulf %202, %204 : vector<8x256xf32>
    %206 = arith.addf %196, %205 : vector<8x256xf32>
    %c0_41 = arith.constant 0 : index
    %c0_42 = arith.constant 0 : index
    %207 = vector.load %arg7[%c0_41, %c0_42] : memref<8x1xf32, #tpu.memory_space<vmem>>, vector<8x1xf32>
    %208 = vector.broadcast %207 : vector<8x1xf32> to vector<8x256xf32>
    %209 = arith.addf %206, %208 : vector<8x256xf32>
    %cst_43 = arith.constant 0.000000e+00 : f32
    %210 = vector.broadcast %cst_43 : f32 to vector<8x256xf32>
    %211 = arith.maximumf %209, %210 : vector<8x256xf32>
    %c0_44 = arith.constant 0 : index
    %c0_45 = arith.constant 0 : index
    %212 = vector.load %arg8[%c0_44, %c0_45] : memref<8x8xf32, #tpu.memory_space<vmem>>, vector<8x8xf32>
    %213 = vector.extract_strided_slice %211 {offsets = [0, 0], sizes = [1, 256], strides = [1, 1]} : vector<8x256xf32> to vector<1x256xf32>
    %214 = vector.extract_strided_slice %212 {offsets = [0, 0], sizes = [8, 1], strides = [1, 1]} : vector<8x8xf32> to vector<8x1xf32>
    %215 = vector.broadcast %213 : vector<1x256xf32> to vector<8x256xf32>
    %216 = vector.broadcast %214 : vector<8x1xf32> to vector<8x256xf32>
    %217 = arith.mulf %215, %216 : vector<8x256xf32>
    %218 = vector.extract_strided_slice %211 {offsets = [1, 0], sizes = [1, 256], strides = [1, 1]} : vector<8x256xf32> to vector<1x256xf32>
    %219 = vector.extract_strided_slice %212 {offsets = [0, 1], sizes = [8, 1], strides = [1, 1]} : vector<8x8xf32> to vector<8x1xf32>
    %220 = vector.broadcast %218 : vector<1x256xf32> to vector<8x256xf32>
    %221 = vector.broadcast %219 : vector<8x1xf32> to vector<8x256xf32>
    %222 = arith.mulf %220, %221 : vector<8x256xf32>
    %223 = arith.addf %217, %222 : vector<8x256xf32>
    %224 = vector.extract_strided_slice %211 {offsets = [2, 0], sizes = [1, 256], strides = [1, 1]} : vector<8x256xf32> to vector<1x256xf32>
    %225 = vector.extract_strided_slice %212 {offsets = [0, 2], sizes = [8, 1], strides = [1, 1]} : vector<8x8xf32> to vector<8x1xf32>
    %226 = vector.broadcast %224 : vector<1x256xf32> to vector<8x256xf32>
    %227 = vector.broadcast %225 : vector<8x1xf32> to vector<8x256xf32>
    %228 = arith.mulf %226, %227 : vector<8x256xf32>
    %229 = arith.addf %223, %228 : vector<8x256xf32>
    %230 = vector.extract_strided_slice %211 {offsets = [3, 0], sizes = [1, 256], strides = [1, 1]} : vector<8x256xf32> to vector<1x256xf32>
    %231 = vector.extract_strided_slice %212 {offsets = [0, 3], sizes = [8, 1], strides = [1, 1]} : vector<8x8xf32> to vector<8x1xf32>
    %232 = vector.broadcast %230 : vector<1x256xf32> to vector<8x256xf32>
    %233 = vector.broadcast %231 : vector<8x1xf32> to vector<8x256xf32>
    %234 = arith.mulf %232, %233 : vector<8x256xf32>
    %235 = arith.addf %229, %234 : vector<8x256xf32>
    %236 = vector.extract_strided_slice %211 {offsets = [4, 0], sizes = [1, 256], strides = [1, 1]} : vector<8x256xf32> to vector<1x256xf32>
    %237 = vector.extract_strided_slice %212 {offsets = [0, 4], sizes = [8, 1], strides = [1, 1]} : vector<8x8xf32> to vector<8x1xf32>
    %238 = vector.broadcast %236 : vector<1x256xf32> to vector<8x256xf32>
    %239 = vector.broadcast %237 : vector<8x1xf32> to vector<8x256xf32>
    %240 = arith.mulf %238, %239 : vector<8x256xf32>
    %241 = arith.addf %235, %240 : vector<8x256xf32>
    %242 = vector.extract_strided_slice %211 {offsets = [5, 0], sizes = [1, 256], strides = [1, 1]} : vector<8x256xf32> to vector<1x256xf32>
    %243 = vector.extract_strided_slice %212 {offsets = [0, 5], sizes = [8, 1], strides = [1, 1]} : vector<8x8xf32> to vector<8x1xf32>
    %244 = vector.broadcast %242 : vector<1x256xf32> to vector<8x256xf32>
    %245 = vector.broadcast %243 : vector<8x1xf32> to vector<8x256xf32>
    %246 = arith.mulf %244, %245 : vector<8x256xf32>
    %247 = arith.addf %241, %246 : vector<8x256xf32>
    %248 = vector.extract_strided_slice %211 {offsets = [6, 0], sizes = [1, 256], strides = [1, 1]} : vector<8x256xf32> to vector<1x256xf32>
    %249 = vector.extract_strided_slice %212 {offsets = [0, 6], sizes = [8, 1], strides = [1, 1]} : vector<8x8xf32> to vector<8x1xf32>
    %250 = vector.broadcast %248 : vector<1x256xf32> to vector<8x256xf32>
    %251 = vector.broadcast %249 : vector<8x1xf32> to vector<8x256xf32>
    %252 = arith.mulf %250, %251 : vector<8x256xf32>
    %253 = arith.addf %247, %252 : vector<8x256xf32>
    %254 = vector.extract_strided_slice %211 {offsets = [7, 0], sizes = [1, 256], strides = [1, 1]} : vector<8x256xf32> to vector<1x256xf32>
    %255 = vector.extract_strided_slice %212 {offsets = [0, 7], sizes = [8, 1], strides = [1, 1]} : vector<8x8xf32> to vector<8x1xf32>
    %256 = vector.broadcast %254 : vector<1x256xf32> to vector<8x256xf32>
    %257 = vector.broadcast %255 : vector<8x1xf32> to vector<8x256xf32>
    %258 = arith.mulf %256, %257 : vector<8x256xf32>
    %259 = arith.addf %253, %258 : vector<8x256xf32>
    %c0_46 = arith.constant 0 : index
    %c0_47 = arith.constant 0 : index
    %260 = vector.load %arg9[%c0_46, %c0_47] : memref<8x1xf32, #tpu.memory_space<vmem>>, vector<8x1xf32>
    %261 = vector.broadcast %260 : vector<8x1xf32> to vector<8x256xf32>
    %262 = arith.addf %259, %261 : vector<8x256xf32>
    %cst_48 = arith.constant 0.000000e+00 : f32
    %263 = vector.broadcast %cst_48 : f32 to vector<8x256xf32>
    %264 = arith.maximumf %262, %263 : vector<8x256xf32>
    %c0_49 = arith.constant 0 : index
    %c0_50 = arith.constant 0 : index
    %c0_51 = arith.constant 0 : index
    %265 = vector.load %arg10[%c0_49, %c0_50, %c0_51] : memref<1x8x256xf32, #tpu.memory_space<vmem>>, vector<1x8x256xf32>
    %266 = vector.shape_cast %265 : vector<1x8x256xf32> to vector<8x256xf32>
    %267 = vector.shape_cast %264 : vector<8x256xf32> to vector<1x8x256xf32>
    tpu.vector_store %arg10[%c0_49, %c0_50, %c0_51], %267 {strides = array<i32>} : memref<1x8x256xf32, #tpu.memory_space<vmem>>, vector<1x8x256xf32>,
    return
  }
  func.func @transform_0(%arg0: i32) -> (i32, i32, i32) {
    %c0_i32 = arith.constant 0 : i32
    %c0_i32_0 = arith.constant 0 : i32
    %c0_i32_1 = arith.constant 0 : i32
    return %arg0, %c0_i32, %c0_i32_0 : i32, i32, i32
  }
  func.func @transform_1(%arg0: i32) -> (i32, i32) {
    %c0_i32 = arith.constant 0 : i32
    %c0_i32_0 = arith.constant 0 : i32
    %c0_i32_1 = arith.constant 0 : i32
    return %c0_i32, %c0_i32_0 : i32, i32
  }
  func.func @transform_2(%arg0: i32) -> (i32, i32) {
    %c0_i32 = arith.constant 0 : i32
    %c0_i32_0 = arith.constant 0 : i32
    %c0_i32_1 = arith.constant 0 : i32
    return %c0_i32, %c0_i32_0 : i32, i32
  }
  func.func @transform_3(%arg0: i32) -> (i32, i32) {
    %c0_i32 = arith.constant 0 : i32
    %c0_i32_0 = arith.constant 0 : i32
    %c0_i32_1 = arith.constant 0 : i32
    return %c0_i32, %c0_i32_0 : i32, i32
  }
  func.func @transform_4(%arg0: i32) -> (i32, i32) {
    %c0_i32 = arith.constant 0 : i32
    %c0_i32_0 = arith.constant 0 : i32
    %c0_i32_1 = arith.constant 0 : i32
    return %c0_i32, %c0_i32_0 : i32, i32
  }
  func.func @transform_5(%arg0: i32) -> (i32, i32) {
    %c0_i32 = arith.constant 0 : i32
    %c0_i32_0 = arith.constant 0 : i32
    %c0_i32_1 = arith.constant 0 : i32
    return %c0_i32, %c0_i32_0 : i32, i32
  }
  func.func @transform_6(%arg0: i32) -> (i32, i32) {
    %c0_i32 = arith.constant 0 : i32
    %c0_i32_0 = arith.constant 0 : i32
    %c0_i32_1 = arith.constant 0 : i32
    return %c0_i32, %c0_i32_0 : i32, i32
  }
  func.func @transform_7(%arg0: i32) -> (i32, i32) {
    %c0_i32 = arith.constant 0 : i32
    %c0_i32_0 = arith.constant 0 : i32
    %c0_i32_1 = arith.constant 0 : i32
    return %c0_i32, %c0_i32_0 : i32, i32
  }
  func.func @transform_8(%arg0: i32) -> (i32, i32) {
    %c0_i32 = arith.constant 0 : i32
    %c0_i32_0 = arith.constant 0 : i32
    %c0_i32_1 = arith.constant 0 : i32
    return %c0_i32, %c0_i32_0 : i32, i32
  }
  func.func @transform_9(%arg0: i32) -> (i32, i32, i32) {
    %c0_i32 = arith.constant 0 : i32
    %c0_i32_0 = arith.constant 0 : i32
    %c0_i32_1 = arith.constant 0 : i32
    return %arg0, %c0_i32, %c0_i32_0 : i32, i32, i32
  }
}

</mosaic_0001>

<bundles_post_ra>
// kernel: tpu_custom_call.1
= control target key start
LH: loop header
LB: loop body
LE: loop exit
PB: predicated region body
PF: predicated region fallthrough
CT: control target
= control target key end

     0   :  { %14 = vsyncpa [#allocation3], 0  ;;  %s1698_s0 = inlined_call_operand.vmem [shape: f32[2,4,256], index: 0, kind: input, shape index: {}]   ;;  %s1699_s1 = inlined_call_operand.vmem [shape: f32[4,9], index: 1, kind: input, shape index: {}]   ;;  %s1700_s2 = inlined_call_operand.vmem [shape: f32[4,1], index: 2, kind: input, shape index: {}]   ;;  %s1701_s3 = inlined_call_operand.vmem [shape: f32[8,4], index: 3, kind: input, shape index: {}]   ;;  %s1702_s4 = inlined_call_operand.vmem [shape: f32[8,1], index: 4, kind: input, shape index: {}]   ;;  %s1703_s5 = inlined_call_operand.vmem [shape: f32[8,9], index: 5, kind: input, shape index: {}]   ;;  %s1704_s6 = inlined_call_operand.vmem [shape: f32[8,1], index: 6, kind: input, shape index: {}]   ;;  %s1705_s7 = inlined_call_operand.vmem [shape: f32[8,8], index: 7, kind: input, shape index: {}]   ;;  %s1706_s8 = inlined_call_operand.vmem [shape: f32[8,1], index: 8, kind: input, shape index: {}]   ;;  %s1707_s9 = inlined_call_operand.hbm [shape: f32[2,8,256], index: 9, kind: output, shape index: {}]  }
   0x1   :  { %16 = vsyncpa [#allocation3 + $0x1], 0  ;;  %s1220_s30 = smov 0   ;;  %s1222_s10 = smov 0  }
   0x2   :  { %s1224_s11 = smov 0   ;;  %s1226_s12 = smov 0  }
   0x3 LB: > { %s1241_s13 = sadd.s32 4294967295, %s1149_s12   ;;  %s985_s14 = sadd.s32 4294967294, %s1149_s12   ;;  %s1149_s12 = sphi %s1226_s12, %s1735_s12   ;;  %s1145_s11 = sphi %s1224_s11, %s1734_s11   ;;  %s1141_s10 = sphi %s1222_s10, %s1733_s10   ;;  %s1137_s30 = sphi %s1220_s30, %s1732_s30  }
   0x4   : > { %s1245_s15 = sadd.s32 1, %s1149_s12   ;;  %s223_s16 = sadd.s32 1, %s1145_s11 }
   0x5   : > { %s220_s17 = ssub.s32 %s1149_s12, %s1245_s15  ;;  %p233_p0 = scmp.ne.s32.totalorder %s1145_s11, %s1141_s10 }
   0x6   : > { %p221_p1 = scmp.eq.s32.totalorder %s220_s17, 0  ;;  %p234_p2 = scmp.eq.s32.totalorder %s1241_s13, 1 }
   0x7   : > { %p239_p3 = scmp.ne.s32.totalorder %s1141_s10, %s1137_s30  ;;  %p240_p4 = scmp.eq.s32.totalorder %s985_s14, 1 }
   0x8   : > { %s1256_s18 = scalar_select %p221_p1, %s1145_s11, %s223_s16  }
   0x9   : > { %p1258_p5 = por %p234_p2, %p233_p0  ;;  %p1262_p6 = por %p240_p4, %p239_p3 }
   0xa   : > { %p988_p7 = scmp.ge.s32.totalorder %s1149_s12, 1  ;;  %p290_p8 = scmp.lt.s32.totalorder %s1149_s12, 3 }
   0xc   : > { %p291_p9 = pnand %p988_p7, %p290_p8 }
   0xd   : > { %v345_v0 = vld [vmem:[%s1699_s1] sm:$0xf] (!%p291_p9)  ;;  %p326_p10 = scmp.lt.s32.totalorder (!%p291_p9), %s1241_s13, 1  ;;  %v1151_v1 = vmov (!%p291_p9), 2   ;;  %v1152_v2 = vmov (!%p291_p9), 1   ;;  %v1153_v3 = vmov (!%p291_p9), 4   ;;  %v332_v26 = vlaneseq (!%p291_p9) }
   0xe   : > { %294 = sbr.rel (%p291_p9) target bundleno = 443 (0x1bb), region = 56  ;;  %1057 = vset.pattern.permute.xlu1 (!%p291_p9), %v1151_v1  ;;  %1056 = vset.pattern.permute.xlu0 (!%p291_p9), %v1152_v2  ;;  %v1154_v5 = vmov (!%p291_p9), 5   ;;  %s1155_s28 = smov (!%p291_p9), 17   ;;  %v1156_v6 = vmov (!%p291_p9), 3   ;;  %v1159_v8 = vmov (!%p291_p9), 7   ;;  %v1160_v9 = vmov (!%p291_p9), 6  }
   0xf   : > { %408 = vperm.xlu1 (!%p291_p9), %1057, %v345_v0   ;;  %385 = vperm.xlu0 (!%p291_p9), %1056, %v345_v0   ;;  %s1157_s29 = smov (!%p291_p9), 16   ;;  %s1158_s14 = smov (!%p291_p9), 15   ;;  %v1161_v10 = vmov (!%p291_p9), 0   ;;  %v1166_v11 = vmov (!%p291_p9), 8   ;;  %v541_v12 = vld [vmem:[%s1700_s2] sm:$0xf] (!%p291_p9) }
  0x10   : > { %s1162_s16 = smov (!%p291_p9), 1   ;;  %s1163_s17 = smov (!%p291_p9), 127   ;;  %v551_v13 = vld [vmem:[%s1701_s3] sm:$0xff] (!%p291_p9)  ;;  %v1348_v28 = vand.u32 (!%p291_p9), 127, %v332_v26  ;;  %v1168_v37 = vmov (!%p291_p9), 839922192  }
  0x11   : > { %s1164_s21 = smov (!%p291_p9), 113   ;;  %s1165_s22 = smov (!%p291_p9), 112   ;;  %v625_v14 = vld [vmem:[%s1703_s5] sm:$0xff] (!%p291_p9)  ;;  %v440_v38 = vunpack.c.l.s4 (!%p291_p9), %v1168_v37  ;;  %v1383_v45 = vshrl.u32 (!%p291_p9), %v332_v26, 7 }
  0x12   : > { %v615_v15 = vld [vmem:[%s1702_s4] sm:$0xff] (!%p291_p9)  ;;  %v335_v30 = vand.u32 (!%p291_p9), 15, %v1348_v28  ;;  %v1354_v33 = vadd.s32 (!%p291_p9), 128, %v1348_v28  ;;  %vm353_vm0 = vcmp.lt.s32.totalorder (!%p291_p9), %v1348_v28, 17  ;;  %vm337_vm1 = vcmp.ge.s32.totalorder (!%p291_p9), %v1348_v28, 16  ;;  %s1169_s26 = smov (!%p291_p9), [#allocation2]  }
  0x13   : > { %1058 = vset.pattern.permute.xlu1 (!%p291_p9), %v1153_v3  ;;  %1060 = vset.pattern.permute.xlu0 (!%p291_p9), %v1154_v5  ;;  %v761_v16 = vld [vmem:[%s1704_s6] sm:$0xff] (!%p291_p9)  ;;  %vm375_vm2 = vcmp.lt.s32.totalorder (!%p291_p9), %v1348_v28, 16  ;;  %vm396_vm6 = vcmp.lt.s32.totalorder (!%p291_p9), %v1348_v28, 15  ;;  %v441_v48 = vunpack.c.0.s8 (!%p291_p9), %v440_v38  ;;  %vm419_vm8 = vcmp.lt.s32.totalorder (!%p291_p9), %v1348_v28, 1 }
  0x14   : > { %437 = vperm.xlu1 (!%p291_p9), %1058, %v345_v0   ;;  %vm1359_vm3 = vcmp.ge.s32.totalorder (!%p291_p9), %v335_v30, 1  ;;  %v336_v36 = vand.u32 (!%p291_p9), 15, %v1354_v33  ;;  %vm1376_vm5 = vcmp.le.s32.totalorder (!%p291_p9), %v335_v30, 14  ;;  %vm457_vm11 = vcmp.lt.s32.totalorder (!%p291_p9), %v1348_v28, 127 }
  0x15   : > { %s327_s23 = scalar_select %p326_p10, %s1241_s13, 1  ;;  %vm1372_vm4 = vmand %vm337_vm1, %vm1359_vm3  ;;  %v444_v63 = vsub.s32 %v441_v48, %v1383_v45  ;;  %vm1708_vm12 = vcmp.lt.s32.totalorder %v1348_v28, 113  ;;  %vm340_vm13 = vcmp.lt.s32.totalorder %v1354_v33, 240  ;;  %vm1709_vm14 = vcmp.lt.s32.totalorder %v1348_v28, 112 }
  0x16   : > { %vm1387_vm7 = vcmp.ge.s32.totalorder %v336_v36, 1  ;;  %vm1400_vm9 = vmand %vm337_vm1, %vm1376_vm5  ;;  %vm1408_vm10 = vcmp.le.s32.totalorder %v336_v36, 14 }
  0x17   : > { %s997_s24 = sshll.u32 %s327_s23, 3  ;;  %vm1451_vm15 = vmand %vm340_vm13, %vm1387_vm7 }
  0x18   : > { %s330_s27 = scalar_lea.vmem %s1698_s0, %s997_s24  ;;  %1059 = vset.pattern.permute.xlu1 %v1156_v6 }
  0x19   : > { %v1279_v4 = vld [vmem:[%s330_s27] sm:$0xff]  ;;  %429 = vperm.xlu1 %1059, %v345_v0   ;;  %s1167_s27 = smov 111  }
  0x1a   : > { %349 = vrot.lane.b32.xlu0 %v1279_v4, %s1155_s28  ;;  %v347_v7 = vcombine.high %v1279_v4, %v1279_v4 }
  0x1d   : > { %351 = vrot.lane.b32.xlu1 %v347_v7, %s1155_s28 }
  0x1e   : > { %371 = vrot.lane.b32.xlu0 %v1279_v4, %s1157_s29  ;;  %1063 = vset.pattern.permute.xlu1 %v1159_v8 }
  0x21   : > { %373 = vrot.lane.b32.xlu1 %v347_v7, %s1157_s29 }
  0x22   : > { %392 = vrot.lane.b32.xlu0 %v1279_v4, %s1158_s14 }
  0x25   : > { %394 = vrot.lane.b32.xlu1 %v347_v7, %s1158_s14 }
  0x26   : > { %467 = vperm.xlu0 %1060, %v345_v0  }
  0x29   : > { %415 = vrot.lane.b32.xlu1 %v1279_v4, %s1162_s16 }
  0x2a   : > { %1061 = vset.pattern.permute.xlu0 %v1160_v9 }
  0x2b   : > { %490 = vperm.xlu0 %1061, %v345_v0  }
  0x2d   : > { %417 = vrot.lane.b32.xlu1 %v347_v7, %s1162_s16 }
  0x2f   : > { %1062 = vset.pattern.permute.xlu0 %v1161_v10 }
  0x30   : > { %366 = vperm.xlu0 %1062, %v345_v0  }
  0x31   : > { %511 = vperm.xlu1 %1063, %v345_v0  }
  0x34   : > { %455 = vrot.lane.b32.xlu0 %v347_v7, %s1163_s17 }
  0x35   : > { %453 = vrot.lane.b32.xlu1 %v1279_v4, %s1163_s17 }
  0x36   : > { %1064 = vset.pattern.permute.xlu1 %v1166_v11 }
  0x38   : > { %474 = vrot.lane.b32.xlu0 %v1279_v4, %s1164_s21 }
  0x39   : > { %534 = vperm.xlu1 %1064, %v345_v0  }
  0x3c   : > { %497 = vrot.lane.b32.xlu0 %v1279_v4, %s1165_s22 }
  0x3d   : > { %476 = vrot.lane.b32.xlu1 %v347_v7, %s1164_s21 }
  0x3e   : > { %1065 = vset.pattern.permute.xlu1 %v1152_v2 }
  0x40   : > { %544 = vperm.xlu0 %1062, %v541_v12  }
  0x41   : > { %499 = vrot.lane.b32.xlu1 %v347_v7, %s1165_s22 }
  0x44   : > { %562 = vperm.xlu0 %1062, %v551_v13  }
  0x45   : > { %518 = vrot.lane.b32.xlu1 %v1279_v4, %s1167_s27 }
  0x48   : > { %1066 = vset.pattern.permute.xlu0 %v1151_v1 }
  0x49   : > { %592 = vperm.xlu0 %1066, %v551_v13   ;;  %520 = vrot.lane.b32.xlu1 %v347_v7, %s1167_s27 }
  0x4d   : > { %1071 = vset.pattern.permute.xlu0 %v1156_v6  ;;  %576 = vperm.xlu1 %1065, %v551_v13  }
  0x4e   : > { %682 = vperm.xlu0 %1071, %v625_v14  }
  0x51   : > { %1067 = vset.pattern.permute.xlu1 %v1156_v6 }
  0x52   : > { %1072 = vset.pattern.permute.xlu0 %v1153_v3  ;;  %608 = vperm.xlu1 %1067, %v551_v13  }
  0x53   : > { %690 = vperm.xlu0 %1072, %v625_v14  }
  0x56   : > { %1068 = vset.pattern.permute.xlu1 %v1161_v10 }
  0x57   : > { %1073 = vset.pattern.permute.xlu0 %v1154_v5  ;;  %618 = vperm.xlu1 %1068, %v615_v15  }
  0x58   : > { %706 = vperm.xlu0 %1073, %v625_v14  }
  0x5b   : > { %1069 = vset.pattern.permute.xlu1 %v1152_v2 }
  0x5c   : > { %1074 = vset.pattern.permute.xlu0 %v1160_v9  ;;  %650 = vperm.xlu1 %1069, %v625_v14  }
  0x5d   : > { %722 = vperm.xlu0 %1074, %v625_v14  }
  0x60   : > { %1070 = vset.pattern.permute.xlu1 %v1151_v1 }
  0x61   : > { %1075 = vset.pattern.permute.xlu0 %v1161_v10  ;;  %666 = vperm.xlu1 %1070, %v625_v14  }
  0x62   : > { %636 = vperm.xlu0 %1075, %v625_v14  }
  0x65   : > { %1076 = vset.pattern.permute.xlu1 %v1159_v8 }
  0x66   : > { %764 = vperm.xlu0 %1075, %v761_v16   ;;  %738 = vperm.xlu1 %1076, %v625_v14  }
  0x6a   : > { %1077 = vset.pattern.permute.xlu1 %v1166_v11 }
  0x6b   : > { %754 = vperm.xlu1 %1077, %v625_v14  }
  0x6f   : > { %1078 = vset.pattern.permute.xlu1 %v1152_v2 }
  0x8e   : > { %v1340_v17 = vpop.permute.xlu1 %408  ;;  %v386_v18 = vpop.permute.xlu0 %385 }
  0x92   : > { %v350_v19 = vpop.permute.xlu0 %349 }
  0x93   : > { %v1342_v20 = vpop.permute.xlu1 %437 }
  0x96   : > { %v372_v21 = vpop.permute.xlu0 %371 }
  0x98   : > { %v1344_v22 = vpop.permute.xlu1 %429 }
  0x9a   : > { %v393_v24 = vpop.permute.xlu0 %392 }
  0x9c   : > { %v352_v23 = vpop.permute.xlu1 %351 }
  0x9d   : > { %v355_v40 = vsel %vm353_vm0, %v352_v23, %v350_v19  ;;  %v354_v46 = vsel %vm353_vm0, %v350_v19, %v352_v23  ;;  %v445_v19 = vrot.slane %v1342_v20, %v444_v63 }
  0x9e   : > { %v362_v50 = vsel %vm1372_vm4, %v355_v40, 0.0  ;;  %v363_v56 = vsel %vm1387_vm7, %v354_v46, 0.0 }
  0x9f   : > { %v447_v36 = vmul.f32 %v445_v19, %v1279_v4 }
  0xa0   : > { %v374_v25 = vpop.permute.xlu1 %373 }
  0xa1   : > { %v377_v41 = vsel %vm375_vm2, %v374_v25, %v372_v21  ;;  %v376_v54 = vsel %vm375_vm2, %v372_v21, %v374_v25 }
  0xa2   : > { %v382_v49 = vsel %vm337_vm1, %v377_v41, 0.0  ;;  %v389_v2 = vmul.f32 %v386_v18, %v376_v54 }
  0xa3   : > { %v388_v59 = vmul.f32 %v386_v18, %v382_v49 }
  0xa4   : > { %v395_v29 = vpop.permute.xlu1 %394 }
  0xa5   : > { %v1346_v27 = vpop.permute.xlu0 %467  ;;  %v398_v52 = vsel %vm396_vm6, %v395_v29, %v393_v24  ;;  %v397_v60 = vsel %vm396_vm6, %v393_v24, %v395_v29 }
  0xa6   : > { %v405_v0 = vsel %vm1400_vm9, %v398_v52, 0.0  ;;  %v406_v12 = vsel %vm1408_vm10, %v397_v60, 0.0  ;;  %v449_v52 = vcombine.high %v447_v36, %v447_v36 }
  0xa7   : > { %v411_v15 = vmul.f32 %v1340_v17, %v405_v0  ;;  %v412_v23 = vmul.f32 %v1340_v17, %v406_v12 }
  0xa8   : > { %v416_v32 = vpop.permute.xlu1 %415 }
  0xaa   : > { %v1351_v31 = vpop.permute.xlu0 %490 }
  0xac   : > { %v418_v35 = vpop.permute.xlu1 %417 }
  0xad   : > { %v421_v62 = vsel %vm419_vm8, %v418_v35, %v416_v32  ;;  %v420_v11 = vsel %vm419_vm8, %v416_v32, %v418_v35 }
  0xae   : > { %v426_v13 = vsel %vm1359_vm3, %v421_v62, 0.0  ;;  %v427_v18 = vsel %vm1387_vm7, %v420_v11, 0.0 }
  0xaf   : > { %v367_v39 = vpop.permute.xlu0 %366  ;;  %v432_v25 = vmul.f32 %v1344_v22, %v426_v13  ;;  %v433_v20 = vmul.f32 %v1344_v22, %v427_v18 }
  0xb0   : > { %v1381_v44 = vpop.permute.xlu1 %511  ;;  %v369_v53 = vmul.f32 %v367_v39, %v362_v50  ;;  %v370_v61 = vmul.f32 %v367_v39, %v363_v56 }
  0xb2   : > { %v390_v7 = vadd.f32 %v388_v59, %v369_v53  ;;  %v391_v16 = vadd.f32 %v389_v2, %v370_v61 }
  0xb3   : > { %v456_v57 = vpop.permute.xlu0 %455 }
  0xb4   : > { %v454_v58 = vpop.permute.xlu1 %453  ;;  %v413_v24 = vadd.f32 %v411_v15, %v390_v7  ;;  %v414_v30 = vadd.f32 %v412_v23, %v391_v16 }
  0xb5   : > { %v458_v26 = vsel %vm457_vm11, %v454_v58, %v456_v57  ;;  %v459_v32 = vsel %vm457_vm11, %v456_v57, %v454_v58 }
  0xb6   : > { %v464_v17 = vsel %vm1376_vm5, %v458_v26, 0.0  ;;  %v434_v37 = vadd.f32 %v432_v25, %v413_v24  ;;  %v465_v39 = vsel %vm1408_vm10, %v459_v32, 0.0  ;;  %v435_v46 = vadd.f32 %v433_v20, %v414_v30 }
  0xb7   : > { %v475_v21 = vpop.permute.xlu0 %474  ;;  %v470_v48 = vmul.f32 %v1346_v27, %v464_v17  ;;  %v471_v54 = vmul.f32 %v1346_v27, %v465_v39  ;;  %v1493_v30 = vsub.s32 0, %v1383_v45  ;;  %v1496_v20 = vsub.s32 1, %v1383_v45 }
  0xb8   : > { %v535_v14 = vpop.permute.xlu1 %534  ;;  %v451_v53 = vadd.f32 %v447_v36, %v434_v37  ;;  %v452_v60 = vadd.f32 %v449_v52, %v435_v46  ;;  %v1499_v17 = vsub.s32 2, %v1383_v45  ;;  %v1502_v36 = vsub.s32 3, %v1383_v45 }
  0xba   : > { %v472_v61 = vadd.f32 %v470_v48, %v451_v53  ;;  %v473_v63 = vadd.f32 %v471_v54, %v452_v60 }
  0xbb   : > { %v498_v40 = vpop.permute.xlu0 %497 }
  0xbc   : > { %v477_v29 = vpop.permute.xlu1 %476 }
  0xbd   : > { %v479_v35 = vsel %vm1708_vm12, %v475_v21, %v477_v29  ;;  %v480_v38 = vsel %vm1708_vm12, %v477_v29, %v475_v21  ;;  %vm522_vm12 = vcmp.lt.s32.totalorder %v1348_v28, 111 }
  0xbe   : > { %v487_v41 = vsel %vm1359_vm3, %v479_v35, 0.0  ;;  %v488_v50 = vsel %vm1451_vm15, %v480_v38, 0.0 }
  0xbf   : > { %v493_v56 = vmul.f32 %v1351_v31, %v487_v41  ;;  %v494_v62 = vmul.f32 %v1351_v31, %v488_v50  ;;  %v545_v15 = vpop.permute.xlu0 %544 }
  0xc0   : > { %v500_v4 = vpop.permute.xlu1 %499 }
  0xc1   : > { %v503_v49 = vsel %vm1709_vm14, %v500_v4, %v498_v40  ;;  %v502_v57 = vsel %vm1709_vm14, %v498_v40, %v500_v4  ;;  %v495_v0 = vadd.f32 %v493_v56, %v472_v61  ;;  %vm1480_vm14 = vmand %vm340_vm13, %vm1408_vm10  ;;  %v496_v12 = vadd.f32 %v494_v62, %v473_v63 }
  0xc2   : > { %v509_v58 = vsel %vm340_vm13, %v503_v49, 0.0  ;;  %v514_v2 = vmul.f32 %v1381_v44, %v502_v57 }
  0xc3   : > { %v515_v27 = vmul.f32 %v1381_v44, %v509_v58  ;;  %v563_v32 = vpop.permute.xlu0 %562 }
  0xc4   : > { %v519_v59 = vpop.permute.xlu1 %518  ;;  %v516_v19 = vadd.f32 %v514_v2, %v495_v0 }
  0xc5   : > { %v517_v18 = vadd.f32 %v515_v27, %v496_v12 }
  0xc8   : > { %v521_v11 = vpop.permute.xlu1 %520  ;;  %v593_v4 = vpop.permute.xlu0 %592 }
  0xc9   : > { %v523_v31 = vsel %vm522_vm12, %v519_v59, %v521_v11  ;;  %v524_v13 = vsel %vm522_vm12, %v521_v11, %v519_v59 }
  0xca   : > { %v531_v44 = vsel %vm1376_vm5, %v523_v31, 0.0  ;;  %v532_v16 = vsel %vm1480_vm14, %v524_v13, 0.0 }
  0xcb   : > { %v537_v21 = vmul.f32 %v535_v14, %v531_v44  ;;  %v538_v23 = vmul.f32 %v535_v14, %v532_v16  ;;  %v771_v16 = vld [vmem:[%s1705_s7] sm:$0xff] }
  0xcc   : > { %v577_v35 = vpop.permute.xlu1 %576 }
  0xcd   : > { %v539_v24 = vadd.f32 %v537_v21, %v516_v19  ;;  %v540_v25 = vadd.f32 %v538_v23, %v517_v18  ;;  %v899_v19 = vld [vmem:[%s1706_s8] sm:$0xff] }
  0xcf   : > { %v547_v26 = vadd.f32 %v545_v15, %v539_v24  ;;  %v548_v29 = vadd.f32 %v545_v15, %v540_v25 }
  0xd1   : > { %v549_v37 = vmax.f32 %v547_v26, 0.0  ;;  %v550_v14 = vmax.f32 %v548_v29, 0.0  ;;  %v609_v57 = vpop.permute.xlu1 %608 }
  0xd3   : > { %v555_v38 = vrot.slane %v549_v37, %v1493_v30  ;;  %v559_v39 = vrot.slane %v550_v14, %v1493_v30  ;;  %v570_v40 = vrot.slane %v549_v37, %v1496_v20  ;;  %v574_v41 = vrot.slane %v550_v14, %v1496_v20 }
  0xd4   : > { %v586_v46 = vrot.slane %v549_v37, %v1499_v17  ;;  %v590_v48 = vrot.slane %v550_v14, %v1499_v17  ;;  %v602_v49 = vrot.slane %v549_v37, %v1502_v36  ;;  %v606_v50 = vrot.slane %v550_v14, %v1502_v36 }
  0xd5   : > { %v565_v52 = vmul.f32 %v563_v32, %v555_v38  ;;  %v566_v53 = vmul.f32 %v563_v32, %v559_v39  ;;  %v579_v54 = vmul.f32 %v577_v35, %v570_v40  ;;  %v580_v56 = vmul.f32 %v577_v35, %v574_v41 }
  0xd6   : > { %v595_v60 = vmul.f32 %v593_v4, %v586_v46  ;;  %v596_v61 = vmul.f32 %v593_v4, %v590_v48  ;;  %v611_v0 = vmul.f32 %v609_v57, %v602_v49  ;;  %v612_v2 = vmul.f32 %v609_v57, %v606_v50  ;;  %v619_v27 = vpop.permute.xlu1 %618 }
  0xd7   : > { %v581_v58 = vadd.f32 %v579_v54, %v565_v52  ;;  %v582_v59 = vadd.f32 %v580_v56, %v566_v53 }
  0xd9   : > { %v597_v62 = vadd.f32 %v595_v60, %v581_v58  ;;  %v598_v63 = vadd.f32 %v596_v61, %v582_v59 }
  0xdb   : > { %v613_v11 = vadd.f32 %v611_v0, %v597_v62  ;;  %v614_v12 = vadd.f32 %v612_v2, %v598_v63 }
  0xdd   : > { %v621_v31 = vadd.f32 %v619_v27, %v613_v11  ;;  %v622_v13 = vadd.f32 %v619_v27, %v614_v12 }
  0xdf   : > { %v1512_v15 = vmax.f32 %v621_v31, 0.0  ;;  %v1518_v44 = vmax.f32 %v622_v13, 0.0 }
  0xe1   : > { %641 = vrot.lane.b32.xlu0 %v1512_v15, %s1157_s29  ;;  %626 = vrot.lane.b32.xlu1 %v1512_v15, %s1155_s28 }
  0xe5   : > { %699 = vrot.lane.b32.xlu0 %v1518_v44, %s1163_s17  ;;  %628 = vrot.lane.b32.xlu1 %v1518_v44, %s1155_s28  ;;  %s1091_s28 = sshll.u32 %s1169_s26, 4  ;;  %s1092_s28 = int_to_ptr.vmem [resolvable:$false] %s1091_s28 }
  0xe9   : > { %713 = vrot.lane.b32.xlu0 %v1512_v15, %s1164_s21  ;;  %643 = vrot.lane.b32.xlu1 %v1518_v44, %s1157_s29  ;;  %s1093_s29 = scalar_lea.vmem %s1092_s28, 512 }
  0xed   : > { %729 = vrot.lane.b32.xlu0 %v1512_v15, %s1165_s22  ;;  %657 = vrot.lane.b32.xlu1 %v1512_v15, %s1158_s14 }
  0xf1   : > { %659 = vrot.lane.b32.xlu1 %v1518_v44, %s1158_s14  ;;  %782 = vperm.xlu0 %1075, %v771_v16   ;;  %s323_s14 = sand.u32 1, %s1141_s10  }
  0xf2   : > { %s912_s25 = scalar_lea.sflag [#allocation3], %s323_s14 }
  0xf5   : > { %673 = vrot.lane.b32.xlu1 %v1512_v15, %s1162_s16  ;;  %1079 = vset.pattern.permute.xlu0 %v1151_v1  ;;  %v651_v1 = vpop.permute.xlu1 %650 }
  0xf6   : > { %812 = vperm.xlu0 %1079, %v771_v16  }
  0xf9   : > { %675 = vrot.lane.b32.xlu1 %v1518_v44, %s1162_s16  ;;  %s989_s16 = sshll.u32 %s323_s14, 4 }
  0xfa   : > { %1082 = vset.pattern.permute.xlu0 %v1154_v5  ;;  %v667_v5 = vpop.permute.xlu1 %666 }
  0xfb   : > { %860 = vperm.xlu0 %1082, %v771_v16  }
  0xfd   : > { %697 = vrot.lane.b32.xlu1 %v1512_v15, %s1163_s17  ;;  %s998_s17 = sshll.u32 %s1241_s13, 8 }
  0xfe   : > { %v1561_v18 = vpop.permute.xlu1 %738  ;;  %s1656_s24 = scalar_lea.hbm %s1707_s9, %s998_s17 }
  0xff   : > { %1085 = vset.pattern.permute.xlu0 %v1161_v10  ;;  %v683_v10 = vpop.permute.xlu0 %682 }
 0x100   : > { %902 = vperm.xlu0 %1085, %v899_v19  }
 0x101   : > { %715 = vrot.lane.b32.xlu1 %v1518_v44, %s1164_s21  ;;  %s325_s21 = scalar_lea.vmem [#allocation2], %s989_s16 }
 0x102   : > { %v1563_v24 = vpop.permute.xlu1 %754 }
 0x103   : > { %v691_v21 = vpop.permute.xlu0 %690 }
 0x105   : > { %731 = vrot.lane.b32.xlu1 %v1518_v44, %s1165_s22  ;;  %s926_s22 = sshll.u32 %s325_s21, 4  ;;  %s1658_s22 = int_to_ptr.vmem [resolvable:$true] %s926_s22 }
 0x106   : > { %s1087_s13 = scalar_lea.vmem %s1658_s22, 256  ;;  %p1094_p0 = scmp.lt.s32.totalorder %s1658_s22, %s1092_s28 }
 0x107   : > { %v707_v23 = vpop.permute.xlu0 %706  ;;  %p1088_p11 = scmp.ne.s32.totalorder %s1658_s22, %s1087_s13  ;;  %p1095_p1 = scmp.lt.s32.totalorder %s1093_s29, %s1087_s13 }
 0x109   : > { %745 = vrot.lane.b32.xlu1 %v1512_v15, %s1167_s27  ;;  %p1089_p12 = pnand %p1088_p11, %p1258_p5  ;;  %p1096_p2 = por %p1095_p1, %p1094_p0 }
 0x10b   : > { %p1090_p13 = pneg %p1089_p12 }
 0x10d   : > { %747 = vrot.lane.b32.xlu1 %v1518_v44, %s1167_s27  ;;  %p1097_p3 = pnand %p1096_p2, %p1090_p13 }
 0x111   : > { %796 = vperm.xlu1 %1078, %v771_v16  }
 0x115   : > { %1080 = vset.pattern.permute.xlu1 %v1156_v6  ;;  %v1565_v6 = vpop.permute.xlu0 %722 }
 0x116   : > { %828 = vperm.xlu1 %1080, %v771_v16  }
 0x119   : > { %v637_v26 = vpop.permute.xlu0 %636 }
 0x11a   : > { %1081 = vset.pattern.permute.xlu1 %v1153_v3 }
 0x11b   : > { %844 = vperm.xlu1 %1081, %v771_v16  }
 0x11f   : > { %1083 = vset.pattern.permute.xlu1 %v1160_v9  ;;  %v1567_v9 = vpop.permute.xlu0 %764 }
 0x120   : > { %876 = vperm.xlu1 %1083, %v771_v16  }
 0x124   : > { %1084 = vset.pattern.permute.xlu1 %v1159_v8 }
 0x125   : > { %892 = vperm.xlu1 %1084, %v771_v16  }
 0x153   : > { %v627_v25 = vpop.permute.xlu1 %626  ;;  %v642_v35 = vpop.permute.xlu0 %641 }
 0x157   : > { %v629_v3 = vpop.permute.xlu1 %628  ;;  %v700_v46 = vpop.permute.xlu0 %699 }
 0x158   : > { %v631_v38 = vsel %vm353_vm0, %v629_v3, %v627_v25  ;;  %v630_v41 = vsel %vm353_vm0, %v627_v25, %v629_v3  ;;  %vm1728_vm0 = vcmp.lt.s32.totalorder %v1348_v28, 113 }
 0x159   : > { %v632_v48 = vsel %vm1372_vm4, %v631_v38, 0.0  ;;  %v633_v57 = vsel %vm1387_vm7, %v630_v41, 0.0 }
 0x15a   : > { %v639_v59 = vmul.f32 %v637_v26, %v632_v48  ;;  %v640_v63 = vmul.f32 %v637_v26, %v633_v57  ;;  %v693_v26 = vmul.f32 %v691_v21, %v1512_v15 }
 0x15b   : > { %v644_v29 = vpop.permute.xlu1 %643  ;;  %v714_v11 = vpop.permute.xlu0 %713 }
 0x15c   : > { %v646_v37 = vsel %vm375_vm2, %v644_v29, %v642_v35  ;;  %v645_v49 = vsel %vm375_vm2, %v642_v35, %v644_v29  ;;  %vm1730_vm2 = vcmp.lt.s32.totalorder %v1348_v28, 112 }
 0x15d   : > { %v647_v40 = vsel %vm337_vm1, %v646_v37, 0.0  ;;  %v654_v51 = vmul.f32 %v651_v1, %v645_v49  ;;  %vm1729_vm1 = vmmov %vm1728_vm0 }
 0x15e   : > { %v653_v53 = vmul.f32 %v651_v1, %v647_v40  ;;  %vm1731_vm4 = vmmov %vm1730_vm2 }
 0x15f   : > { %v658_v32 = vpop.permute.xlu1 %657  ;;  %v656_v12 = vadd.f32 %v654_v51, %v640_v63 }
 0x160   : > { %v655_v0 = vadd.f32 %v653_v53, %v639_v59 }
 0x163   : > { %v660_v8 = vpop.permute.xlu1 %659 }
 0x164   : > { %v662_v39 = vsel %vm396_vm6, %v660_v8, %v658_v32  ;;  %v661_v4 = vsel %vm396_vm6, %v658_v32, %v660_v8  ;;  %v730_v32 = vpop.permute.xlu0 %729 }
 0x165   : > { %v663_v50 = vsel %vm1400_vm9, %v662_v39, 0.0  ;;  %v664_v42 = vsel %vm1408_vm10, %v661_v4, 0.0 }
 0x166   : > { %v669_v60 = vmul.f32 %v667_v5, %v663_v50  ;;  %v670_v2 = vmul.f32 %v667_v5, %v664_v42 }
 0x167   : > { %v674_v14 = vpop.permute.xlu1 %673 }
 0x168   : > { %v671_v31 = vadd.f32 %v669_v60, %v655_v0  ;;  %v672_v25 = vadd.f32 %v670_v2, %v656_v12 }
 0x16b   : > { %v676_v52 = vpop.permute.xlu1 %675 }
 0x16c   : > { %v677_v54 = vsel %vm419_vm8, %v674_v14, %v676_v52  ;;  %v678_v56 = vsel %vm419_vm8, %v676_v52, %v674_v14  ;;  %v694_v14 = vmul.f32 %v691_v21, %v1518_v44 }
 0x16d   : > { %v679_v58 = vsel %vm1359_vm3, %v678_v56, 0.0  ;;  %v680_v61 = vsel %vm1387_vm7, %v677_v54, 0.0 }
 0x16e   : > { %v685_v27 = vmul.f32 %v683_v10, %v679_v58  ;;  %v686_v13 = vmul.f32 %v683_v10, %v680_v61 }
 0x16f   : > { %v698_v62 = vpop.permute.xlu1 %697 }
 0x170   : > { %v701_v16 = vsel %vm457_vm11, %v698_v62, %v700_v46  ;;  %v687_v3 = vadd.f32 %v685_v27, %v671_v31  ;;  %v702_v1 = vsel %vm457_vm11, %v700_v46, %v698_v62  ;;  %v688_v29 = vadd.f32 %v686_v13, %v672_v25  ;;  %v783_v2 = vpop.permute.xlu0 %782 }
 0x171   : > { %v703_v5 = vsel %vm1376_vm5, %v701_v16, 0.0  ;;  %v704_v8 = vsel %vm1408_vm10, %v702_v1, 0.0 }
 0x172   : > { %v695_v38 = vadd.f32 %v693_v26, %v687_v3  ;;  %v709_v39 = vmul.f32 %v707_v23, %v703_v5  ;;  %v696_v41 = vadd.f32 %v694_v14, %v688_v29  ;;  %v710_v4 = vmul.f32 %v707_v23, %v704_v8 }
 0x173   : > { %v716_v19 = vpop.permute.xlu1 %715  ;;  %v837_v3 = vsub.s32 4, %v1383_v45  ;;  %v853_v26 = vsub.s32 5, %v1383_v45 }
 0x174   : > { %v717_v47 = vsel %vm1728_vm0, %v714_v11, %v716_v19  ;;  %v718_v10 = vsel %vm1729_vm1, %v716_v19, %v714_v11  ;;  %v711_v44 = vadd.f32 %v709_v39, %v695_v38  ;;  %v712_v49 = vadd.f32 %v710_v4, %v696_v41 }
 0x175   : > { %v719_v35 = vsel %vm1359_vm3, %v717_v47, 0.0  ;;  %v720_v15 = vsel %vm1451_vm15, %v718_v10, 0.0  ;;  %v813_v25 = vpop.permute.xlu0 %812  ;;  %v869_v39 = vsub.s32 6, %v1383_v45 }
 0x176   : > { %v725_v46 = vmul.f32 %v1565_v6, %v719_v35  ;;  %v726_v21 = vmul.f32 %v1565_v6, %v720_v15 }
 0x177   : > { %v732_v37 = vpop.permute.xlu1 %731 }
 0x178   : > { %v734_v40 = vsel %vm1730_vm2, %v732_v37, %v730_v32  ;;  %v733_v55 = vsel %vm1731_vm4, %v730_v32, %v732_v37  ;;  %v727_v50 = vadd.f32 %v725_v46, %v711_v44  ;;  %v728_v23 = vadd.f32 %v726_v21, %v712_v49 }
 0x179   : > { %v736_v34 = vsel %vm340_vm13, %v734_v40, 0.0  ;;  %v741_v52 = vmul.f32 %v1561_v18, %v733_v55 }
 0x17a   : > { %v742_v22 = vmul.f32 %v1561_v18, %v736_v34  ;;  %v885_v34 = vsub.s32 7, %v1383_v45 }
 0x17b   : > { %v746_v48 = vpop.permute.xlu1 %745  ;;  %v743_v57 = vadd.f32 %v741_v52, %v727_v50 }
 0x17c   : > { %v744_v42 = vadd.f32 %v742_v22, %v728_v23 }
 0x17f   : > { %v748_v53 = vpop.permute.xlu1 %747 }
 0x180   : > { %v749_v54 = vsel %vm522_vm12, %v746_v48, %v748_v53  ;;  %v750_v56 = vsel %vm522_vm12, %v748_v53, %v746_v48 }
 0x181   : > { %v751_v33 = vsel %vm1376_vm5, %v749_v54, 0.0  ;;  %v752_v6 = vsel %vm1480_vm14, %v750_v56, 0.0 }
 0x182   : > { %v757_v58 = vmul.f32 %v1563_v24, %v751_v33  ;;  %v758_v18 = vmul.f32 %v1563_v24, %v752_v6 }
 0x184   : > { %v759_v59 = vadd.f32 %v757_v58, %v743_v57  ;;  %v760_v51 = vadd.f32 %v758_v18, %v744_v42 }
 0x186   : > { %v767_v60 = vadd.f32 %v1567_v9, %v759_v59  ;;  %v768_v61 = vadd.f32 %v1567_v9, %v760_v51 }
 0x188   : > { %v769_v28 = vmax.f32 %v767_v60, 0.0  ;;  %v770_v62 = vmax.f32 %v768_v61, 0.0 }
 0x18a   : > { %v775_v43 = vrot.slane %v769_v28, %v1493_v30  ;;  %v779_v63 = vrot.slane %v770_v62, %v1493_v30  ;;  %v790_v7 = vrot.slane %v769_v28, %v1496_v20  ;;  %v794_v0 = vrot.slane %v770_v62, %v1496_v20 }
 0x18b   : > { %v806_v27 = vrot.slane %v769_v28, %v1499_v17  ;;  %v810_v24 = vrot.slane %v770_v62, %v1499_v17  ;;  %v822_v47 = vrot.slane %v769_v28, %v1502_v36  ;;  %v826_v20 = vrot.slane %v770_v62, %v1502_v36  ;;  %v861_v36 = vpop.permute.xlu0 %860 }
 0x18c   : > { %v785_v12 = vmul.f32 %v783_v2, %v775_v43  ;;  %v786_v31 = vmul.f32 %v783_v2, %v779_v63  ;;  %v838_v8 = vrot.slane %v769_v28, %v837_v3  ;;  %v842_v35 = vrot.slane %v770_v62, %v837_v3 }
 0x18d   : > { %v815_v30 = vmul.f32 %v813_v25, %v806_v27  ;;  %v816_v1 = vmul.f32 %v813_v25, %v810_v24  ;;  %v854_v37 = vrot.slane %v769_v28, %v853_v26  ;;  %v858_v14 = vrot.slane %v770_v62, %v853_v26 }
 0x18e   : > { %v870_v21 = vrot.slane %v769_v28, %v869_v39  ;;  %v874_v49 = vrot.slane %v770_v62, %v869_v39  ;;  %v886_v54 = vrot.slane %v769_v28, %v885_v34  ;;  %v890_v56 = vrot.slane %v770_v62, %v885_v34 }
 0x18f   : > { %v863_v48 = vmul.f32 %v861_v36, %v854_v37  ;;  %v864_v44 = vmul.f32 %v861_v36, %v858_v14  ;;  %v903_v45 = vpop.permute.xlu0 %902 }
 0x190   : > { %v797_v11 = vpop.permute.xlu1 %796 }
 0x191   : > { %v799_v13 = vmul.f32 %v797_v11, %v790_v7  ;;  %v800_v9 = vmul.f32 %v797_v11, %v794_v0 }
 0x193   : > { %v801_v16 = vadd.f32 %v799_v13, %v785_v12  ;;  %v802_v19 = vadd.f32 %v800_v9, %v786_v31 }
 0x195   : > { %v829_v5 = vpop.permute.xlu1 %828  ;;  %v817_v17 = vadd.f32 %v815_v30, %v801_v16  ;;  %v818_v29 = vadd.f32 %v816_v1, %v802_v19 }
 0x196   : > { %v831_v10 = vmul.f32 %v829_v5, %v822_v47  ;;  %v832_v32 = vmul.f32 %v829_v5, %v826_v20 }
 0x198   : > { %v833_v40 = vadd.f32 %v831_v10, %v817_v17  ;;  %v834_v15 = vadd.f32 %v832_v32, %v818_v29 }
 0x19a   : > { %v845_v38 = vpop.permute.xlu1 %844 }
 0x19b   : > { %v847_v41 = vmul.f32 %v845_v38, %v838_v8  ;;  %v848_v4 = vmul.f32 %v845_v38, %v842_v35 }
 0x19d   : > { %v849_v46 = vadd.f32 %v847_v41, %v833_v40  ;;  %v850_v55 = vadd.f32 %v848_v4, %v834_v15 }
 0x19f   : > { %v877_v50 = vpop.permute.xlu1 %876  ;;  %v865_v52 = vadd.f32 %v863_v48, %v849_v46  ;;  %v866_v22 = vadd.f32 %v864_v44, %v850_v55 }
 0x1a0   : > { %v879_v53 = vmul.f32 %v877_v50, %v870_v21  ;;  %v880_v23 = vmul.f32 %v877_v50, %v874_v49 }
 0x1a2   : > { %v881_v6 = vadd.f32 %v879_v53, %v865_v52  ;;  %v882_v57 = vadd.f32 %v880_v23, %v866_v22 }
 0x1a4   : > { %v893_v33 = vpop.permute.xlu1 %892 }
 0x1a5   : > { %v895_v42 = vmul.f32 %v893_v33, %v886_v54  ;;  %v896_v58 = vmul.f32 %v893_v33, %v890_v56 }
 0x1a7   : > { %v897_v18 = vadd.f32 %v895_v42, %v881_v6  ;;  %v898_v59 = vadd.f32 %v896_v58, %v882_v57 }
 0x1a9   : > { %v905_v51 = vadd.f32 %v903_v45, %v897_v18  ;;  %v906_v60 = vadd.f32 %v903_v45, %v898_v59 }
 0x1ab   : > { %v907_v61 = vmax.f32 %v905_v51, 0.0  ;;  %v908_v43 = vmax.f32 %v906_v60, 0.0 }
 0x1ad   : > { %909 = vst [vmem:[%s325_s21] sm:$0xff] %v907_v61  ;;  %910 = vst [vmem:[%s325_s21 + $0x8] sm:$0xff] %v908_v43 }
 0x1ae   : > { %1100 = shalt.err (!%p1097_p3)
}
 0x1af   : > { %s1101_s14 = scalar_lea.hbm %s1656_s24, 256  ;;  %s1105_s21 = scalar_lea.hbm %s1707_s9, 512 }
 0x1b0   : > { %p1102_p4 = scmp.ne.s32.totalorder %s1656_s24, %s1101_s14  ;;  %p1106_p9 = scmp.lt.u32.totalorder %s1656_s24, %s1707_s9 }
 0x1b1   : > { %p1107_p10 = scmp.lt.u32.totalorder %s1105_s21, %s1101_s14  ;;  %p1109_p12 = scmp.lt.u32.totalorder %s1101_s14, %s1656_s24 }
 0x1b2   : > { %p1103_p7 = pnand %p1102_p4, %p1258_p5 }
 0x1b3   : > { %p1108_p11 = por %p1107_p10, %p1106_p9 }
 0x1b4   : > { %p1104_p8 = pneg %p1103_p7 }
 0x1b5   : > { %p1110_p13 = por %p1109_p12, %p1108_p11 }
 0x1b7   : > { %p1111_p0 = pnand %p1110_p13, %p1104_p8 }
 0x1b9   : > { %1114 = shalt.err (!%p1111_p0)
}
 0x1ba   : > { %999 = dma.vmem_to_hbm [thread:$0]  (%p1258_p5), %s1658_s22, 256, %s1656_s24, %s912_s25  }
 0x1bb PF: > { %p1005_p1 = scmp.ge.s32.totalorder %s1149_s12, 2  ;;  %s938_s13 = sand.u32 1, %s1137_s30  }
 0x1bc   : > { %s939_s26 = scalar_lea.sflag [#allocation3], %s938_s13 }
 0x1bd   : > { %p1002_p2 = pnand %p1005_p1, %p1262_p6 }
 0x1bf   : > { %1132 = dma.done.wait (!%p1002_p2), %s939_s26, 256  }
 0x1c0   : > { %1134 = vsyncadd (!%p1002_p2), %s939_s26, 4294967040  ;;  %p19_p3 = scmp.ge.s32.totalorder %s1245_s15, 4   ;;  %s1732_s30 = smov %s1141_s10 }
 0x1c1   : > { %s1733_s10 = smov %s1145_s11  ;;  %s1734_s11 = smov %s1256_s18 }
 0x1c2   : > { %s1735_s12 = smov %s1245_s15  ;;  %21 = sbr.rel (!%p19_p3) target bundleno = 3 (0x3), region = 91 }
 0x1c9   :  { %944 = vsyncpa [#allocation3], 1 }
 0x1ca   :  { %946 = vsyncpa [#allocation3 + $0x1], 1 }

</bundles_post_ra>
